<compile_context>
chip_gen: v5e
topology: v5e:2x2
jax: 0.10.0
libtpu: 0.0.40
codegen_flags: <defaults>
</compile_context>

<pallas_src>
import jax
import jax.numpy as jnp
from jax.experimental import pallas as pl
from jax.experimental.pallas import tpu as pltpu

_EPS = 1e-5


def _round_up(x, m):
    return ((x + m - 1) // m) * m


def _pick_tile(dim_padded, pref):
    """Largest multiple of 128 that divides `dim_padded` and is <= pref."""
    t = min(pref, dim_padded)
    while dim_padded % t:
        t -= 128
    return t


def linear_bn_tanh_kernel(x_ref, w_ref, b_ref, gamma_ref, beta_ref,
                          o_ref, acc_ref):
    k = pl.program_id(1)

    @pl.when(k == 0)
    def _():
        acc_ref[...] = jnp.zeros_like(acc_ref)

    # fc partial product: (B, TK) x (TK, TN) — weight already transposed.
    acc_ref[...] += jnp.dot(
        x_ref[...], w_ref[...], preferred_element_type=jnp.float32)

    @pl.when(k == pl.num_programs(1) - 1)
    def _():
        h = acc_ref[...] + b_ref[...]                       # (B, TN) + (1, TN)

        # BatchNorm1d (training mode: batch mean, biased batch variance),
        # folded into a single per-feature affine.
        mean = jnp.mean(h, axis=0, keepdims=True)           # (1, TN)
        var = jnp.mean((h - mean) ** 2, axis=0, keepdims=True)
        scale = gamma_ref[...] * jax.lax.rsqrt(var + _EPS)  # (1, TN)
        shift = beta_ref[...] - mean * scale                # (1, TN)

        # activation: tanh (EUP)
        o_ref[...] = jnp.tanh(h * scale + shift).astype(o_ref.dtype)


def linear_block(x, weight, bias, gamma, beta):
    """x: (B, in_f) f32; weight: (out_f, in_f); bias/gamma/beta: (out_f,)."""
    B, in_f = x.shape
    out_f = weight.shape[0]

    # Lane-dense padding of K and N to multiples of 128; 256/512-preferring
    # tiles for larger problems.  Padded feature columns produce exact zeros
    # through BN (var=0 -> 0*rsqrt(eps)) and are sliced off at the end.
    K_pad = _round_up(in_f, 128)
    N_pad = _round_up(out_f, 128)
    TK = _pick_tile(K_pad, 512)
    TN = _pick_tile(N_pad, 256)

    # Pre-transpose the weight once in HBM: (out_f, in_f) -> (in_f, out_f).
    wt = jnp.transpose(weight)
    x_p = jnp.pad(x, ((0, 0), (0, K_pad - in_f)))
    wt_p = jnp.pad(wt, ((0, K_pad - in_f), (0, N_pad - out_f)))
    bias_p = jnp.pad(bias, (0, N_pad - out_f)).reshape(1, N_pad)
    gamma_p = jnp.pad(gamma, (0, N_pad - out_f)).reshape(1, N_pad)
    beta_p = jnp.pad(beta, (0, N_pad - out_f)).reshape(1, N_pad)

    grid = (N_pad // TN, K_pad // TK)   # N parallel, K (reduction) last

    out = pl.pallas_call(
        linear_bn_tanh_kernel,
        out_shape=jax.ShapeDtypeStruct((B, N_pad), x.dtype),
        grid_spec=pltpu.PrefetchScalarGridSpec(
            num_scalar_prefetch=0,
            grid=grid,
            in_specs=[
                pl.BlockSpec((B, TK), lambda n, k: (0, k)),   # x
                pl.BlockSpec((TK, TN), lambda n, k: (k, n)),  # W^T
                pl.BlockSpec((1, TN), lambda n, k: (0, n)),   # bias
                pl.BlockSpec((1, TN), lambda n, k: (0, n)),   # gamma
                pl.BlockSpec((1, TN), lambda n, k: (0, n)),   # beta
            ],
            out_specs=pl.BlockSpec((B, TN), lambda n, k: (0, n)),
            scratch_shapes=[pltpu.VMEM((B, TN), jnp.float32)],
        ),
        compiler_params=pltpu.CompilerParams(
            dimension_semantics=("parallel", "arbitrary")),
    )(x_p, wt_p, bias_p, gamma_p, beta_p)

    return out[:, :out_f]


if __name__ == "__main__":
    B, in_features, out_features = 8, 32, 16

    key = jax.random.PRNGKey(0)
    kx, kw, kb = jax.random.split(key, 3)

    x = jax.random.normal(kx, (B, in_features), dtype=jnp.float32)

    # Deterministic parameter init (shapes match nn.Linear / BatchNorm1d).
    bound = 1.0 / (in_features ** 0.5)
    weight = jax.random.uniform(
        kw, (out_features, in_features), minval=-bound, maxval=bound,
        dtype=jnp.float32)
    bias = jax.random.uniform(
        kb, (out_features,), minval=-bound, maxval=bound, dtype=jnp.float32)
    gamma = jnp.ones((out_features,), jnp.float32)   # BN weight init
    beta = jnp.zeros((out_features,), jnp.float32)   # BN bias init

    out = linear_block(x, weight, bias, gamma, beta)
    jax.block_until_ready(out)

    # Pure-JAX reference check (training-mode BN, biased variance).
    h = x @ weight.T + bias
    mean = h.mean(axis=0, keepdims=True)
    var = ((h - mean) ** 2).mean(axis=0, keepdims=True)
    ref = jnp.tanh((h - mean) / jnp.sqrt(var + _EPS) * gamma + beta)
    assert jnp.allclose(out, ref, atol=1e-5, rtol=1e-5), "mismatch vs reference"

    print("KERNEL_OK")
</pallas_src>

<mosaic_0001>
module attributes {stable_mosaic.version = 11 : i64} {
  func.func @linear_bn_tanh_kernel(%arg0: i32, %arg1: i32, %arg2: memref<8x128xf32, #tpu.memory_space<vmem>>, %arg3: memref<128x128xf32, #tpu.memory_space<vmem>>, %arg4: memref<1x128xf32, #tpu.memory_space<vmem>>, %arg5: memref<1x128xf32, #tpu.memory_space<vmem>>, %arg6: memref<1x128xf32, #tpu.memory_space<vmem>>, %arg7: memref<8x128xf32, #tpu.memory_space<vmem>>, %arg8: memref<8x128xf32, #tpu.memory_space<vmem>>) attributes {dimension_semantics = [#tpu.dimension_semantics<parallel>, #tpu.dimension_semantics<arbitrary>], iteration_bounds = array<i64: 1, 1>, scalar_prefetch = 0 : i64, scratch_operands = 1 : i64, tpu.core_type = #tpu.core_type<tc>, window_params = [{transform_indices = @transform_0, window_bounds = array<i64: 8, 128>}, {transform_indices = @transform_1, window_bounds = array<i64: 128, 128>}, {transform_indices = @transform_2, window_bounds = array<i64: 1, 128>}, {transform_indices = @transform_3, window_bounds = array<i64: 1, 128>}, {transform_indices = @transform_4, window_bounds = array<i64: 1, 128>}, {transform_indices = @transform_5, window_bounds = array<i64: 8, 128>}]} {
    %c0_i32 = arith.constant 0 : i32
    %0 = arith.cmpi eq, %arg1, %c0_i32 : i32
    %1 = arith.extui %0 : i1 to i32
    %c0_i32_0 = arith.constant 0 : i32
    %2 = arith.cmpi ne, %1, %c0_i32_0 : i32
    scf.if %2 {
      %cst_10 = arith.constant 0.000000e+00 : f32
      %12 = vector.broadcast %cst_10 : f32 to vector<8x128xf32>
      %c0_11 = arith.constant 0 : index
      %c0_12 = arith.constant 0 : index
      %13 = vector.load %arg8[%c0_11, %c0_12] : memref<8x128xf32, #tpu.memory_space<vmem>>, vector<8x128xf32>
      tpu.vector_store %arg8[%c0_11, %c0_12], %12 {strides = array<i32>} : memref<8x128xf32, #tpu.memory_space<vmem>>, vector<8x128xf32>,
    } else {
    }
    %c0 = arith.constant 0 : index
    %c0_1 = arith.constant 0 : index
    %3 = vector.load %arg8[%c0, %c0_1] : memref<8x128xf32, #tpu.memory_space<vmem>>, vector<8x128xf32>
    %c0_2 = arith.constant 0 : index
    %c0_3 = arith.constant 0 : index
    %4 = vector.load %arg2[%c0_2, %c0_3] : memref<8x128xf32, #tpu.memory_space<vmem>>, vector<8x128xf32>
    %c0_4 = arith.constant 0 : index
    %c0_5 = arith.constant 0 : index
    %5 = vector.load %arg3[%c0_4, %c0_5] : memref<128x128xf32, #tpu.memory_space<vmem>>, vector<128x128xf32>
    %cst = arith.constant dense<0.000000e+00> : vector<8x128xf32>
    %6 = tpu.matmul %4, %5, %cst {dimension_numbers = #tpu.dot_dimension_numbers<[1], [0], [0], [1], [0, 0, 1, 1], [], []>} : vector<8x128xf32>, vector<128x128xf32>, vector<8x128xf32> -> vector<8x128xf32>
    %7 = arith.addf %3, %6 : vector<8x128xf32>
    %c0_6 = arith.constant 0 : index
    %c0_7 = arith.constant 0 : index
    %8 = vector.load %arg8[%c0_6, %c0_7] : memref<8x128xf32, #tpu.memory_space<vmem>>, vector<8x128xf32>
    tpu.vector_store %arg8[%c0_6, %c0_7], %7 {strides = array<i32>} : memref<8x128xf32, #tpu.memory_space<vmem>>, vector<8x128xf32>,
    %c0_i32_8 = arith.constant 0 : i32
    %9 = arith.cmpi eq, %arg1, %c0_i32_8 : i32
    %10 = arith.extui %9 : i1 to i32
    %c0_i32_9 = arith.constant 0 : i32
    %11 = arith.cmpi ne, %10, %c0_i32_9 : i32
    scf.if %11 {
      %c0_10 = arith.constant 0 : index
      %c0_11 = arith.constant 0 : index
      %12 = vector.load %arg8[%c0_10, %c0_11] : memref<8x128xf32, #tpu.memory_space<vmem>>, vector<8x128xf32>
      %c0_12 = arith.constant 0 : index
      %c0_13 = arith.constant 0 : index
      %13 = vector.load %arg4[%c0_12, %c0_13] : memref<1x128xf32, #tpu.memory_space<vmem>>, vector<1x128xf32>
      %14 = vector.broadcast %13 : vector<1x128xf32> to vector<8x128xf32>
      %15 = arith.addf %12, %14 : vector<8x128xf32>
      %cst_14 = arith.constant dense<0.000000e+00> : vector<128xf32>
      %16 = vector.multi_reduction <add>, %15, %cst_14 [0] : vector<8x128xf32> to vector<128xf32>
      %17 = vector.shape_cast %16 : vector<128xf32> to vector<1x128xf32>
      %cst_15 = arith.constant 8.000000e+00 : f32
      %18 = vector.broadcast %cst_15 : f32 to vector<1x128xf32>
      %19 = arith.divf %17, %18 : vector<1x128xf32>
      %20 = vector.broadcast %19 : vector<1x128xf32> to vector<8x128xf32>
      %21 = arith.subf %15, %20 : vector<8x128xf32>
      %22 = arith.mulf %21, %21 : vector<8x128xf32>
      %cst_16 = arith.constant dense<0.000000e+00> : vector<128xf32>
      %23 = vector.multi_reduction <add>, %22, %cst_16 [0] : vector<8x128xf32> to vector<128xf32>
      %24 = vector.shape_cast %23 : vector<128xf32> to vector<1x128xf32>
      %cst_17 = arith.constant 8.000000e+00 : f32
      %25 = vector.broadcast %cst_17 : f32 to vector<1x128xf32>
      %26 = arith.divf %24, %25 : vector<1x128xf32>
      %c0_18 = arith.constant 0 : index
      %c0_19 = arith.constant 0 : index
      %27 = vector.load %arg5[%c0_18, %c0_19] : memref<1x128xf32, #tpu.memory_space<vmem>>, vector<1x128xf32>
      %cst_20 = arith.constant 9.99999974E-6 : f32
      %28 = vector.broadcast %cst_20 : f32 to vector<1x128xf32>
      %29 = arith.addf %26, %28 : vector<1x128xf32>
      %30 = math.rsqrt %29 : vector<1x128xf32>
      %31 = arith.mulf %27, %30 : vector<1x128xf32>
      %c0_21 = arith.constant 0 : index
      %c0_22 = arith.constant 0 : index
      %32 = vector.load %arg6[%c0_21, %c0_22] : memref<1x128xf32, #tpu.memory_space<vmem>>, vector<1x128xf32>
      %33 = arith.mulf %19, %31 : vector<1x128xf32>
      %34 = arith.subf %32, %33 : vector<1x128xf32>
      %35 = vector.broadcast %31 : vector<1x128xf32> to vector<8x128xf32>
      %36 = arith.mulf %15, %35 : vector<8x128xf32>
      %37 = vector.broadcast %34 : vector<1x128xf32> to vector<8x128xf32>
      %38 = arith.addf %36, %37 : vector<8x128xf32>
      %39 = math.tanh %38 : vector<8x128xf32>
      %c0_23 = arith.constant 0 : index
      %c0_24 = arith.constant 0 : index
      %40 = vector.load %arg7[%c0_23, %c0_24] : memref<8x128xf32, #tpu.memory_space<vmem>>, vector<8x128xf32>
      tpu.vector_store %arg7[%c0_23, %c0_24], %39 {strides = array<i32>} : memref<8x128xf32, #tpu.memory_space<vmem>>, vector<8x128xf32>,
    } else {
    }
    return
  }
  func.func @transform_0(%arg0: i32, %arg1: i32) -> (i32, i32) {
    %c0_i32 = arith.constant 0 : i32
    %c0_i32_0 = arith.constant 0 : i32
    return %c0_i32, %arg1 : i32, i32
  }
  func.func @transform_1(%arg0: i32, %arg1: i32) -> (i32, i32) {
    %c0_i32 = arith.constant 0 : i32
    return %arg1, %arg0 : i32, i32
  }
  func.func @transform_2(%arg0: i32, %arg1: i32) -> (i32, i32) {
    %c0_i32 = arith.constant 0 : i32
    %c0_i32_0 = arith.constant 0 : i32
    return %c0_i32, %arg0 : i32, i32
  }
  func.func @transform_3(%arg0: i32, %arg1: i32) -> (i32, i32) {
    %c0_i32 = arith.constant 0 : i32
    %c0_i32_0 = arith.constant 0 : i32
    return %c0_i32, %arg0 : i32, i32
  }
  func.func @transform_4(%arg0: i32, %arg1: i32) -> (i32, i32) {
    %c0_i32 = arith.constant 0 : i32
    %c0_i32_0 = arith.constant 0 : i32
    return %c0_i32, %arg0 : i32, i32
  }
  func.func @transform_5(%arg0: i32, %arg1: i32) -> (i32, i32) {
    %c0_i32 = arith.constant 0 : i32
    %c0_i32_0 = arith.constant 0 : i32
    return %c0_i32, %arg0 : i32, i32
  }
}

</mosaic_0001>

<bundles_post_ra>
// kernel: tpu_custom_call.1
= control target key start
LH: loop header
LB: loop body
LE: loop exit
PB: predicated region body
PF: predicated region fallthrough
CT: control target
= control target key end

     0   :  { %10 = vsyncpa [#allocation4], 0  ;;  %s317_s0 = inlined_call_operand.hbm [shape: f32[8,128], index: 0, kind: input, shape index: {}]   ;;  %s318_s1 = inlined_call_operand.hbm [shape: f32[128,128], index: 1, kind: input, shape index: {}]   ;;  %s319_s2 = inlined_call_operand.vmem [shape: f32[1,128], index: 2, kind: input, shape index: {}]   ;;  %s320_s3 = inlined_call_operand.vmem [shape: f32[1,128], index: 3, kind: input, shape index: {}]   ;;  %s321_s4 = inlined_call_operand.vmem [shape: f32[1,128], index: 4, kind: input, shape index: {}]   ;;  %s322_s5 = inlined_call_operand.hbm [shape: f32[8,128], index: 5, kind: output, shape index: {}]  }
   0x1   :  { %11 = vsyncpa [#allocation7], 0 }
   0x2   :  { %12 = vsyncpa [#allocation5], 0  ;;  %s18_s20 = sshll.u32 %s317_s0, 4  ;;  %s263_s21 = smov [#allocation3]   ;;  %s19_s20 = int_to_ptr.hbm [resolvable:$true] %s18_s20 }
   0x3   :  { %s20_s22 = sshll.u32 %s263_s21, 4  ;;  %s28_s25 = sshll.u32 %s318_s1, 4  ;;  %s21_s22 = int_to_ptr.vmem [resolvable:$true] %s20_s22  ;;  %s29_s25 = int_to_ptr.hbm [resolvable:$true] %s28_s25 }
   0x4   :  { %23 = dma.hbm_to_vmem [thread:$0]  %s19_s20, 128, %s21_s22, [#allocation4]  }
   0x5   :  { %s264_s26 = smov [#allocation6]   ;;  %s265_s28 = smov 128  }
   0x6   :  { %s30_s27 = sshll.u32 %s264_s26, 4  ;;  %s266_s29 = smov 8   ;;  %s31_s27 = int_to_ptr.vmem [resolvable:$true] %s30_s27 }
   0x7   :  { %36 = dma.hbm_to_vmem [thread:$0]  %s29_s25, 2048, %s31_s27, [#allocation7], %s265_s28, %s265_s28, %s266_s29  }
   0x8   :  { %257 = dma.done.wait [#allocation4], 128  }
   0x9   :  { %258 = vsyncadd [#allocation4], 4294967168 }
   0xa   :  { %259 = dma.done.wait [#allocation7], 2048  }
   0xb   :  { %260 = vsyncadd [#allocation7], 4294965248  ;;  %v73_v0 = vld [vmem:[#allocation6 + $0x78] sm:$0xff]  ;;  %v72_v1 = vld [vmem:[#allocation6 + $0x70] sm:$0xff]  ;;  %v267_v17 = vmov 8.0   ;;  %s268_s8 = smov [#allocation8]  }
   0xc   :  { %74 = vmatpush.msra.mxu0 %v73_v0  ;;  %v71_v2 = vld [vmem:[#allocation6 + $0x68] sm:$0xff]  ;;  %v70_v3 = vld [vmem:[#allocation6 + $0x60] sm:$0xff]  ;;  %v69_v4 = vld [vmem:[#allocation6 + $0x58] sm:$0xff]  ;;  %179 = vrcp.f32 %v267_v17  ;;  %s159_s9 = sshll.u32 %s268_s8, 4  ;;  %s161_s11 = sshll.u32 %s322_s5, 4  ;;  %s160_s9 = int_to_ptr.vmem [resolvable:$true] %s159_s9  ;;  %s162_s11 = int_to_ptr.hbm [resolvable:$true] %s161_s11 }
   0xd   :  { %v68_v5 = vld [vmem:[#allocation6 + $0x50] sm:$0xff]  ;;  %v67_v6 = vld [vmem:[#allocation6 + $0x48] sm:$0xff]  ;;  %v66_v7 = vld [vmem:[#allocation6 + $0x40] sm:$0xff] }
   0xe   :  { %75 = vmatpush.msra.mxu0 %v72_v1  ;;  %v65_v8 = vld [vmem:[#allocation6 + $0x38] sm:$0xff]  ;;  %v64_v9 = vld [vmem:[#allocation6 + $0x30] sm:$0xff]  ;;  %v63_v10 = vld [vmem:[#allocation6 + $0x28] sm:$0xff] }
   0xf   :  { %v62_v11 = vld [vmem:[#allocation6 + $0x20] sm:$0xff]  ;;  %v61_v12 = vld [vmem:[#allocation6 + $0x18] sm:$0xff]  ;;  %v60_v13 = vld [vmem:[#allocation6 + $0x10] sm:$0xff] }
  0x10   :  { %76 = vmatpush.msra.mxu0 %v71_v2  ;;  %v59_v14 = vld [vmem:[#allocation6 + $0x8] sm:$0xff]  ;;  %v58_v15 = vld [vmem:[#allocation6] sm:$0xff]  ;;  %v57_v16 = vld [vmem:[#allocation3] sm:$0xff] }
  0x11   :  { %v178_v20 = vld [vmem:[%s319_s2] ss:$0 sm:$0xff] }
  0x12   :  { %77 = vmatpush.msra.mxu0 %v70_v3  ;;  %v180_v18 = vpop.eup %179  ;;  %v128_v49 = vld [vmem:[%s320_s3] sm:$0x1] }
  0x13   :  { %v112_v19 = vmul.f32 8.0, %v180_v18  ;;  %vm116_vm0 = vweird.f32 %v180_v18  ;;  %v141_v53 = vld [vmem:[%s321_s4] sm:$0x1] }
  0x14   :  { %78 = vmatpush.msra.mxu0 %v69_v4 }
  0x15   :  { %v113_v22 = vsub.f32 1.0, %v112_v19 }
  0x16   :  { %79 = vmatpush.msra.mxu0 %v68_v5 }
  0x17   :  { %v114_v25 = vmul.f32 %v180_v18, %v113_v22 }
  0x18   :  { %80 = vmatpush.msra.mxu0 %v67_v6 }
  0x19   :  { %v115_v28 = vadd.f32 %v180_v18, %v114_v25 }
  0x1a   :  { %81 = vmatpush.msra.mxu0 %v66_v7 }
  0x1b   :  { %v117_v31 = vsel %vm116_vm0, %v180_v18, %v115_v28 }
  0x1c   :  { %82 = vmatpush.msra.mxu0 %v65_v8 }
  0x1e   :  { %83 = vmatpush.msra.mxu0 %v64_v9 }
  0x20   :  { %84 = vmatpush.msra.mxu0 %v63_v10 }
  0x22   :  { %85 = vmatpush.msra.mxu0 %v62_v11 }
  0x24   :  { %86 = vmatpush.msra.mxu0 %v61_v12 }
  0x26   :  { %87 = vmatpush.msra.mxu0 %v60_v13 }
  0x28   :  { %88 = vmatpush.msra.mxu0 %v59_v14 }
  0x2a   :  { %89 = vmatpush.msra.mxu0 %v58_v15 }
  0x2b   :  { %90 = vmatmul.f32.vlgmr.msra.gmra.mxu0 %v57_v16 }
  0xa8   :  { %v91_v21 = vpop.f32.mrf.mxu0 }
  0xa9   :  { %v104_v23 = vadd.f32 %v178_v20, %v91_v21 }
  0xab   :  { %v105_v24 = vrot.slane %v104_v23, 4 }
  0xad   :  { %v106_v26 = vadd.f32 %v105_v24, %v104_v23 }
  0xaf   :  { %v107_v27 = vrot.slane %v106_v26, 2 }
  0xb1   :  { %v108_v29 = vadd.f32 %v107_v27, %v106_v26 }
  0xb3   :  { %v109_v30 = vrot.slane %v108_v29, 1 }
  0xb5   :  { %v110_v32 = vadd.f32 %v109_v30, %v108_v29 }
  0xb7   :  { %v118_v33 = vmul.f32 %v117_v31, %v110_v32 }
  0xb9   :  { %v119_v34 = vsub.f32 %v104_v23, %v118_v33 }
  0xbb   :  { %v120_v35 = vmul.f32 %v119_v34, %v119_v34 }
  0xbd   :  { %v121_v36 = vrot.slane %v120_v35, 4 }
  0xbf   :  { %v122_v37 = vadd.f32 %v121_v36, %v120_v35 }
  0xc1   :  { %v123_v38 = vrot.slane %v122_v37, 2 }
  0xc3   :  { %v124_v39 = vadd.f32 %v123_v38, %v122_v37 }
  0xc5   :  { %v125_v40 = vrot.slane %v124_v39, 1 }
  0xc7   :  { %v126_v41 = vadd.f32 %v125_v40, %v124_v39 }
  0xc9   :  { %v127_v42 = vmul.f32 %v126_v41, %v117_v31 }
  0xcb   :  { %v129_v43 = vadd.f32 1e-05, %v127_v42 }
  0xcd   :  { %181 = vrsqrt.f32 %v129_v43  ;;  %vm136_vm2 = vweird.f32 %v129_v43 }
  0xd3   :  { %v182_v44 = vpop.eup %181 }
  0xd4   :  { %v131_v45 = vmul.f32 %v182_v44, %v129_v43  ;;  %vm137_vm1 = vweird.f32 %v182_v44 }
  0xd5   :  { %vm138_vm3 = vmor %vm136_vm2, %vm137_vm1 }
  0xd6   :  { %v132_v46 = vmul.f32 %v182_v44, %v131_v45 }
  0xd8   :  { %v133_v47 = vmul.f32 0.5, %v132_v46 }
  0xda   :  { %v134_v48 = vsub.f32 1.5, %v133_v47 }
  0xdc   :  { %v135_v50 = vmul.f32 %v182_v44, %v134_v48 }
  0xde   :  { %v139_v51 = vsel %vm138_vm3, %v182_v44, %v135_v50 }
  0xdf   :  { %v140_v52 = vmul.f32 %v139_v51, %v128_v49 }
  0xe1   :  { %v142_v54 = vmul.f32 %v140_v52, %v118_v33  ;;  %v145_v55 = vperm.slane %v140_v52, 0 }
  0xe3   :  { %v143_v56 = vsub.f32 %v141_v53, %v142_v54  ;;  %v147_v57 = vmul.f32 %v145_v55, %v104_v23 }
  0xe5   :  { %v149_v58 = vperm.slane %v143_v56, 0 }
  0xe7   :  { %v151_v59 = vadd.f32 %v149_v58, %v147_v57 }
  0xe9   :  { %183 = vtanh.f32 %v151_v59 }
  0xef   :  { %v184_v60 = vpop.eup %183 }
  0xf0   :  { %153 = vst [vmem:[#allocation8] sm:$0xff] %v184_v60 }
  0xf1   :  { %164 = dma.vmem_to_hbm [thread:$0]  %s160_s9, 128, %s162_s11, [#allocation5]  }
  0xf2   :  { %261 = dma.done.wait [#allocation5], 128  }
  0xf3   :  { %262 = vsyncadd [#allocation5], 4294967168 }
  0xf4   :  { %169 = vsyncpa [#allocation4], 1 }
  0xf5   :  { %170 = vsyncpa [#allocation7], 1 }
  0xf6   :  { %171 = vsyncpa [#allocation5], 1 }

</bundles_post_ra>
